<compile_context>
chip_gen: v6e
topology: v6e:2x2x1
jax: 0.10.0
libtpu: 0.0.40
codegen_flags: <defaults>
</compile_context>

<pallas_src>
import functools
import math

import jax
import jax.numpy as jnp
from jax.experimental import pallas as pl
from jax.experimental.pallas import tpu as pltpu

_LANE = 128


def _round_up(x, m):
    return ((x + m - 1) // m) * m


def _vmem_budget():
    """Per-generation VMEM budget (for tile sizing) and scoped Mosaic limit."""
    try:
        cap = int(pltpu.get_tpu_info().vmem_capacity_bytes)
    except Exception:
        cap = 64 * 1024 * 1024                    # v7x-safe fallback (64 MiB/TC)
    budget = cap // 2                             # double-buffers are counted below
    limit = min(int(cap * 0.75), cap - 8 * 1024 * 1024)
    return budget, limit


@functools.lru_cache(maxsize=None)
def _buffered_supported():
    """Probe (once, on real hardware) whether this Pallas build supports
    single-buffered blocks via BlockSpec(pipeline_mode=pl.Buffered(1)).
    Correctness does not depend on the answer — only VMEM footprint does."""
    def _copy(x_ref, o_ref):
        o_ref[...] = x_ref[...]
    try:
        spec = pl.BlockSpec((8, _LANE), lambda i: (0, 0),
                            pipeline_mode=pl.Buffered(1))
        fn = pl.pallas_call(
            _copy,
            out_shape=jax.ShapeDtypeStruct((8, _LANE), jnp.float32),
            grid=(1,),
            in_specs=[spec],
            out_specs=pl.BlockSpec((8, _LANE), lambda i: (0, 0)))
        jax.block_until_ready(fn(jnp.zeros((8, _LANE), jnp.float32)))
        return True
    except Exception:
        return False


def _resident_spec(shape, index_map, use_buffered):
    """Constant-index (VMEM-resident) block; single-buffered when supported so
    Pallas does not double-buffer a block whose index never changes."""
    if use_buffered:
        return pl.BlockSpec(shape, index_map, pipeline_mode=pl.Buffered(1))
    return pl.BlockSpec(shape, index_map)


def _pad_cast(x, rows, cols, dtype):
    """Cast first (so any pad pass moves half the bytes for bf16), pad only if
    needed."""
    x = x.astype(dtype)
    r, c = x.shape
    if r == rows and c == cols:
        return x
    return jnp.pad(x, ((0, rows - r), (0, cols - c)))


def _choose_row_tile(rows_p):
    """Largest of 1024/512/256/128 dividing rows_p, preferring >=2 blocks so a
    'parallel' grid axis can shard across the two TensorCores on megacore
    parts (harmless single-core)."""
    for t in (1024, 512, 256, 128):
        if rows_p % t == 0 and rows_p // t >= 2:
            return t
    for t in (1024, 512, 256, 128):
        if rows_p % t == 0:
            return t
    return rows_p


# ----------------------------------------------------------------------------
# Kernel A: fused   out_tile = (adj_tile @ x) @ W + bias
#   x, W, bias are VMEM-resident (constant block index); adj streams row-slabs.
# ----------------------------------------------------------------------------
def _fused_resident_kernel(a_ref, x_ref, w_ref, b_ref, o_ref):
    # f32 accumulation on the MXU for the N-dim reduction.
    s = jnp.dot(a_ref[...], x_ref[...], preferred_element_type=jnp.float32)
    # Cast back to bf16 so the second matmul also uses the native MXU path.
    o_ref[...] = (jnp.dot(s.astype(w_ref.dtype), w_ref[...],
                          preferred_element_type=jnp.float32)
                  + b_ref[...]).astype(o_ref.dtype)


def _gcn_fused_resident(adj, x, w, bias2d, compute_dtype, budget, limit,
                        use_buffered):
    n, f_in = x.shape
    f_out = w.shape[1]
    esz = jnp.dtype(compute_dtype).itemsize

    n_p = _round_up(n, _LANE)
    fin_p = _round_up(f_in, _LANE)
    fout_p = _round_up(f_out, _LANE)

    tm = _choose_row_tile(n_p)
    res = 1 if use_buffered else 2                 # buffers for resident blocks

    def vmem_bytes(tm_):
        return (2 * tm_ * n_p * esz                # adj row slabs (double-buffered)
                + res * n_p * fin_p * esz          # x, VMEM-resident
                + res * fin_p * fout_p * esz       # W, VMEM-resident
                + res * fout_p * 4                 # bias
                + 2 * tm_ * fout_p * 4             # f32 output blocks
                + tm_ * fin_p * 4)                 # f32 (adj_tile @ x) temporary

    while vmem_bytes(tm) > budget and tm > _LANE:
        tm //= 2
    if vmem_bytes(tm) > budget:
        return None                                # caller falls back to 2-stage

    adj_p = _pad_cast(adj, n_p, n_p, compute_dtype)
    x_p = _pad_cast(x, n_p, fin_p, compute_dtype)
    w_p = _pad_cast(w, fin_p, fout_p, compute_dtype)
    b_p = _pad_cast(bias2d, 1, fout_p, jnp.float32)

    # adj, x, W are each read from HBM exactly once; output written once.
    cost = pl.CostEstimate(
        flops=2 * n_p * n_p * fin_p + 2 * n_p * fin_p * fout_p,
        transcendentals=0,
        bytes_accessed=esz * (n_p * n_p + n_p * fin_p + fin_p * fout_p)
        + 4 * (fout_p + n_p * fout_p))

    out = pl.pallas_call(
        _fused_resident_kernel,
        out_shape=jax.ShapeDtypeStruct((n_p, fout_p), jnp.float32),
        grid_spec=pltpu.PrefetchScalarGridSpec(
            num_scalar_prefetch=0,
            grid=(n_p // tm,),
            in_specs=[
                pl.BlockSpec((tm, n_p), lambda i: (i, 0)),                # adj
                _resident_spec((n_p, fin_p), lambda i: (0, 0), use_buffered),
                _resident_spec((fin_p, fout_p), lambda i: (0, 0), use_buffered),
                _resident_spec((1, fout_p), lambda i: (0, 0), use_buffered),
            ],
            out_specs=pl.BlockSpec((tm, fout_p), lambda i: (i, 0)),
        ),
        compiler_params=pltpu.CompilerParams(
            dimension_semantics=("parallel",),
            vmem_limit_bytes=limit),
        cost_estimate=cost,
    )(adj_p, x_p, w_p, b_p)

    return out[:n, :f_out]


# ----------------------------------------------------------------------------
# Kernel B: matmul with VMEM-resident RHS + bias   out_tile = A_tile @ B + bias
# ----------------------------------------------------------------------------
def _matmul_resident_kernel(a_ref, b_ref, bias_ref, o_ref):
    o_ref[...] = (jnp.dot(a_ref[...], b_ref[...],
                          preferred_element_type=jnp.float32)
                  + bias_ref[...]).astype(o_ref.dtype)


def _matmul_resident_rhs(a, b, bias2d, compute_dtype, out_dtype, budget, limit,
                         use_buffered):
    m, kdim = a.shape
    ncol = b.shape[1]
    esz = jnp.dtype(compute_dtype).itemsize
    oesz = jnp.dtype(out_dtype).itemsize

    mp = _round_up(m, _LANE)
    kp = _round_up(kdim, _LANE)
    ncp = _round_up(ncol, _LANE)

    tm = _choose_row_tile(mp)
    res = 1 if use_buffered else 2

    def vmem_bytes(tm_):
        return (2 * tm_ * kp * esz                 # A blocks (double-buffered)
                + res * kp * ncp * esz             # B, VMEM-resident
                + res * ncp * 4                    # bias
                + 2 * tm_ * ncp * oesz             # output blocks
                + tm_ * ncp * 4)                   # f32 matmul result before cast

    while vmem_bytes(tm) > budget and tm > _LANE:
        tm //= 2
    if vmem_bytes(tm) > budget:
        return None                                # caller falls back to tiled

    a_p = _pad_cast(a, mp, kp, compute_dtype)
    b_p = _pad_cast(b, kp, ncp, compute_dtype)
    bias_p = _pad_cast(bias2d, 1, ncp, jnp.float32)

    cost = pl.CostEstimate(
        flops=2 * mp * kp * ncp,
        transcendentals=0,
        bytes_accessed=esz * (mp * kp + kp * ncp) + 4 * ncp + oesz * mp * ncp)

    out = pl.pallas_call(
        _matmul_resident_kernel,
        out_shape=jax.ShapeDtypeStruct((mp, ncp), out_dtype),
        grid_spec=pltpu.PrefetchScalarGridSpec(
            num_scalar_prefetch=0,
            grid=(mp // tm,),
            in_specs=[
                pl.BlockSpec((tm, kp), lambda i: (i, 0)),                 # A
                _resident_spec((kp, ncp), lambda i: (0, 0), use_buffered),
                _resident_spec((1, ncp), lambda i: (0, 0), use_buffered),
            ],
            out_specs=pl.BlockSpec((tm, ncp), lambda i: (i, 0)),
        ),
        compiler_params=pltpu.CompilerParams(
            dimension_semantics=("parallel",),
            vmem_limit_bytes=limit),
        cost_estimate=cost,
    )(a_p, b_p, bias_p)

    return out[:m, :ncol]


# ----------------------------------------------------------------------------
# Kernel C: generic tiled matmul + bias (fallback when residency doesn't fit)
# ----------------------------------------------------------------------------
def _matmul_tiled_kernel(a_ref, b_ref, bias_ref, o_ref, acc_ref):
    k = pl.program_id(2)

    @pl.when(k == 0)
    def _():
        acc_ref[...] = jnp.zeros_like(acc_ref)

    acc_ref[...] += jnp.dot(a_ref[...], b_ref[...],
                            preferred_element_type=jnp.float32)

    @pl.when(k == pl.num_programs(2) - 1)
    def _():
        o_ref[...] = (acc_ref[...] + bias_ref[...]).astype(o_ref.dtype)


def _matmul_tiled(a, b, bias2d, compute_dtype, out_dtype, budget, limit):
    m, kdim = a.shape
    ncol = b.shape[1]
    esz = jnp.dtype(compute_dtype).itemsize
    oesz = jnp.dtype(out_dtype).itemsize

    mp = _round_up(m, _LANE)
    kp = _round_up(kdim, _LANE)
    ncp = _round_up(ncol, _LANE)

    tm = _choose_row_tile(mp)
    tk = 512 if kp % 512 == 0 else (256 if kp % 256 == 0 else 128)
    tn = 512 if ncp % 512 == 0 else (256 if ncp % 256 == 0 else 128)

    def vmem_bytes(tm_, tn_, tk_):
        return (2 * esz * (tm_ * tk_ + tk_ * tn_)
                + 2 * oesz * tm_ * tn_
                + 4 * tm_ * tn_                    # f32 accumulator scratch
                + 2 * 4 * tn_)                     # bias

    while vmem_bytes(tm, tn, tk) > budget and (tm > 128 or tn > 128 or tk > 128):
        if tk > 128:
            tk //= 2
        elif tm > 128:
            tm //= 2
        else:
            tn //= 2

    a_p = _pad_cast(a, mp, kp, compute_dtype)
    b_p = _pad_cast(b, kp, ncp, compute_dtype)
    bias_p = _pad_cast(bias2d, 1, ncp, jnp.float32)

    grid = (mp // tm, ncp // tn, kp // tk)

    # A is re-read once per output-column block, B once per output-row block.
    cost = pl.CostEstimate(
        flops=2 * mp * kp * ncp,
        transcendentals=0,
        bytes_accessed=esz * (mp * kp * (ncp // tn) + kp * ncp * (mp // tm))
        + 4 * ncp + oesz * mp * ncp)

    out = pl.pallas_call(
        _matmul_tiled_kernel,
        out_shape=jax.ShapeDtypeStruct((mp, ncp), out_dtype),
        grid_spec=pltpu.PrefetchScalarGridSpec(
            num_scalar_prefetch=0,
            grid=grid,
            in_specs=[
                pl.BlockSpec((tm, tk), lambda i, j, k: (i, k)),
                pl.BlockSpec((tk, tn), lambda i, j, k: (k, j)),
                pl.BlockSpec((1, tn), lambda i, j, k: (0, j)),
            ],
            out_specs=pl.BlockSpec((tm, tn), lambda i, j, k: (i, j)),
            scratch_shapes=[pltpu.VMEM((tm, tn), jnp.float32)],
        ),
        compiler_params=pltpu.CompilerParams(
            dimension_semantics=("parallel", "parallel", "arbitrary"),
            vmem_limit_bytes=limit),
        cost_estimate=cost,
    )(a_p, b_p, bias_p)

    return out[:m, :ncol]


# ----------------------------------------------------------------------------
# GraphConvolution forward
# ----------------------------------------------------------------------------
@functools.partial(jax.jit, static_argnames=("compute_dtype", "use_buffered"))
def _graph_convolution_impl(x_feature, mh_adj_matrix, weight, bias,
                            compute_dtype, use_buffered):
    budget, limit = _vmem_budget()

    f_in, f_out = weight.shape
    if bias is None:
        bias2d = jnp.zeros((1, f_out), jnp.float32)
    else:
        bias2d = bias.astype(jnp.float32).reshape(1, f_out)

    if f_in <= f_out:
        # Fused single launch: (adj @ x) @ W + b — same or fewer FLOPs than
        # the other association, and the intermediate never touches HBM.
        out = _gcn_fused_resident(mh_adj_matrix, x_feature, weight, bias2d,
                                  compute_dtype, budget, limit, use_buffered)
        if out is not None:
            return out

    # F_out < F_in (fewer N^2-scaled FLOPs) or fused residency did not fit:
    # support = x @ W  (bf16 intermediate, halves the HBM round trip), then
    # out = adj @ support + bias with support VMEM-resident when possible.
    zero_bias = jnp.zeros((1, f_out), jnp.float32)
    support = _matmul_resident_rhs(x_feature, weight, zero_bias, compute_dtype,
                                   compute_dtype, budget, limit, use_buffered)
    if support is None:
        support = _matmul_tiled(x_feature, weight, zero_bias, compute_dtype,
                                compute_dtype, budget, limit)

    out = _matmul_resident_rhs(mh_adj_matrix, support, bias2d, compute_dtype,
                               jnp.float32, budget, limit, use_buffered)
    if out is None:
        out = _matmul_tiled(mh_adj_matrix, support, bias2d, compute_dtype,
                            jnp.float32, budget, limit)
    return out


def graph_convolution(x_feature, mh_adj_matrix, weight, bias,
                      compute_dtype=jnp.bfloat16):
    """GCN layer forward: adj @ (x_feature @ weight) + bias.

    bf16 MXU operands with f32 accumulation (pass compute_dtype=jnp.float32
    to reproduce torch f32 exactly at roughly twice the HBM traffic)."""
    return _graph_convolution_impl(x_feature, mh_adj_matrix, weight, bias,
                                   compute_dtype=compute_dtype,
                                   use_buffered=_buffered_supported())


def init_params(key, in_features, out_features, bias=True):
    """Matches PyTorch reset_parameters(): uniform(-1/sqrt(out), 1/sqrt(out))."""
    std_v = 1.0 / math.sqrt(out_features)
    kw, kb = jax.random.split(key)
    weight = jax.random.uniform(kw, (in_features, out_features),
                                minval=-std_v, maxval=std_v, dtype=jnp.float32)
    b = (jax.random.uniform(kb, (out_features,), minval=-std_v, maxval=std_v,
                            dtype=jnp.float32) if bias else None)
    return weight, b


if __name__ == "__main__":
    key = jax.random.PRNGKey(0)
    k_x, k_adj, k_p, k_rest = jax.random.split(key, 4)

    def make_adj(k, n):
        a = (jax.random.uniform(k, (n, n)) < 0.08).astype(jnp.float32)
        a = a + jnp.eye(n, dtype=jnp.float32)
        return a / jnp.sum(a, axis=1, keepdims=True)

    def reference(x, adj, w, b):
        f32 = jnp.float32
        xb = x.astype(jnp.bfloat16).astype(f32)
        ab = adj.astype(jnp.bfloat16).astype(f32)
        wb = w.astype(jnp.bfloat16).astype(f32)
        out = ab @ (xb @ wb)
        return out + b if b is not None else out

    # --- Case 1: fused single-launch path (F_in == F_out), aligned shapes ---
    N, F_IN, F_OUT = 256, 128, 128
    x1 = jax.random.normal(k_x, (N, F_IN), dtype=jnp.float32)
    adj1 = make_adj(k_adj, N)
    w1, b1 = init_params(k_p, F_IN, F_OUT, bias=True)

    out1 = jax.block_until_ready(graph_convolution(x1, adj1, w1, b1))
    assert out1.shape == (N, F_OUT)
    assert jnp.allclose(out1, reference(x1, adj1, w1, b1),
                        atol=3e-2, rtol=3e-2), "fused path mismatch"

    # --- Case 2: two-stage path (F_out < F_in), non-divisible shapes, no bias
    k_x2, k_adj2, k_p2 = jax.random.split(k_rest, 3)
    N2, F_IN2, F_OUT2 = 200, 192, 64
    x2 = jax.random.normal(k_x2, (N2, F_IN2), dtype=jnp.float32)
    adj2 = make_adj(k_adj2, N2)
    w2, b2 = init_params(k_p2, F_IN2, F_OUT2, bias=False)

    out2 = jax.block_until_ready(graph_convolution(x2, adj2, w2, b2))
    assert out2.shape == (N2, F_OUT2)
    assert jnp.allclose(out2, reference(x2, adj2, w2, None),
                        atol=3e-2, rtol=3e-2), "two-stage path mismatch"

    # --- Case 3: exercise the generic tiled fallback kernel directly --------
    a3 = jax.random.normal(k_x2, (192, 320), dtype=jnp.float32)
    b3 = jax.random.normal(k_adj2, (320, 192), dtype=jnp.float32)
    bias3 = jnp.zeros((1, 192), jnp.float32)
    out3 = jax.block_until_ready(
        _matmul_tiled(a3, b3, bias3, jnp.bfloat16, jnp.float32,
                      budget=2 * 1024 * 1024, limit=32 * 1024 * 1024))
    ref3 = (a3.astype(jnp.bfloat16).astype(jnp.float32)
            @ b3.astype(jnp.bfloat16).astype(jnp.float32))
    assert jnp.allclose(out3, ref3, atol=2.5e-1, rtol=5e-2), "tiled fallback mismatch"

    print("KERNEL_OK")
</pallas_src>

<mosaic_0001>
module attributes {stable_mosaic.version = 11 : i64} {
  func.func @_copy(%arg0: i32, %arg1: memref<8x128xf32, #tpu.memory_space<vmem>>, %arg2: memref<8x128xf32, #tpu.memory_space<vmem>>) attributes {dimension_semantics = [#tpu.dimension_semantics<arbitrary>], iteration_bounds = array<i64: 1>, scalar_prefetch = 0 : i64, scratch_operands = 0 : i64, tpu.core_type = #tpu.core_type<tc>, window_params = [{pipeline_mode = #tpu.pipeline_mode<synchronous>, transform_indices = @transform_0, window_bounds = array<i64: 8, 128>}, {pipeline_mode = #tpu.pipeline_mode<synchronous>, transform_indices = @transform_1, window_bounds = array<i64: 8, 128>}]} {
    %c0 = arith.constant 0 : index
    %c0_0 = arith.constant 0 : index
    %0 = vector.load %arg1[%c0, %c0_0] : memref<8x128xf32, #tpu.memory_space<vmem>>, vector<8x128xf32>
    %c0_1 = arith.constant 0 : index
    %c0_2 = arith.constant 0 : index
    %1 = vector.load %arg2[%c0_1, %c0_2] : memref<8x128xf32, #tpu.memory_space<vmem>>, vector<8x128xf32>
    tpu.vector_store %arg2[%c0_1, %c0_2], %0 {strides = array<i32>} : memref<8x128xf32, #tpu.memory_space<vmem>>, vector<8x128xf32>,
    return
  }
  func.func @transform_0(%arg0: i32) -> (i32, i32) {
    %c0_i32 = arith.constant 0 : i32
    %c0_i32_0 = arith.constant 0 : i32
    %c0_i32_1 = arith.constant 0 : i32
    return %c0_i32, %c0_i32_0 : i32, i32
  }
  func.func @transform_1(%arg0: i32) -> (i32, i32) {
    %c0_i32 = arith.constant 0 : i32
    %c0_i32_0 = arith.constant 0 : i32
    %c0_i32_1 = arith.constant 0 : i32
    return %c0_i32, %c0_i32_0 : i32, i32
  }
}

module attributes {stable_mosaic.version = 11 : i64} {
  func.func @_fused_resident_kernel(%arg0: i32, %arg1: memref<128x256xbf16, #tpu.memory_space<vmem>>, %arg2: memref<256x128xbf16, #tpu.memory_space<vmem>>, %arg3: memref<128x128xbf16, #tpu.memory_space<vmem>>, %arg4: memref<1x128xf32, #tpu.memory_space<vmem>>, %arg5: memref<128x128xf32, #tpu.memory_space<vmem>>) attributes {dimension_semantics = [#tpu.dimension_semantics<parallel>], iteration_bounds = array<i64: 2>, scalar_prefetch = 0 : i64, scratch_operands = 0 : i64, tpu.core_type = #tpu.core_type<tc>, window_params = [{transform_indices = @transform_0, window_bounds = array<i64: 128, 256>}, {pipeline_mode = #tpu.pipeline_mode<synchronous>, transform_indices = @transform_1, window_bounds = array<i64: 256, 128>}, {pipeline_mode = #tpu.pipeline_mode<synchronous>, transform_indices = @transform_2, window_bounds = array<i64: 128, 128>}, {pipeline_mode = #tpu.pipeline_mode<synchronous>, transform_indices = @transform_3, window_bounds = array<i64: 1, 128>}, {transform_indices = @transform_4, window_bounds = array<i64: 128, 128>}]} {
    %c0 = arith.constant 0 : index
    %c0_0 = arith.constant 0 : index
    %0 = vector.load %arg1[%c0, %c0_0] : memref<128x256xbf16, #tpu.memory_space<vmem>>, vector<128x256xbf16>
    %c0_1 = arith.constant 0 : index
    %c0_2 = arith.constant 0 : index
    %1 = vector.load %arg2[%c0_1, %c0_2] : memref<256x128xbf16, #tpu.memory_space<vmem>>, vector<256x128xbf16>
    %cst = arith.constant dense<0.000000e+00> : vector<128x128xf32>
    %2 = tpu.matmul %0, %1, %cst {dimension_numbers = #tpu.dot_dimension_numbers<[1], [0], [0], [1], [0, 0, 1, 1], [], []>} : vector<128x256xbf16>, vector<256x128xbf16>, vector<128x128xf32> -> vector<128x128xf32>
    %3 = arith.truncf %2 : vector<128x128xf32> to vector<128x128xbf16>
    %c0_3 = arith.constant 0 : index
    %c0_4 = arith.constant 0 : index
    %4 = vector.load %arg3[%c0_3, %c0_4] : memref<128x128xbf16, #tpu.memory_space<vmem>>, vector<128x128xbf16>
    %cst_5 = arith.constant dense<0.000000e+00> : vector<128x128xf32>
    %5 = tpu.matmul %3, %4, %cst_5 {dimension_numbers = #tpu.dot_dimension_numbers<[1], [0], [0], [1], [0, 0, 1, 1], [], []>} : vector<128x128xbf16>, vector<128x128xbf16>, vector<128x128xf32> -> vector<128x128xf32>
    %c0_6 = arith.constant 0 : index
    %c0_7 = arith.constant 0 : index
    %6 = vector.load %arg4[%c0_6, %c0_7] : memref<1x128xf32, #tpu.memory_space<vmem>>, vector<1x128xf32>
    %7 = vector.broadcast %6 : vector<1x128xf32> to vector<128x128xf32>
    %8 = arith.addf %5, %7 : vector<128x128xf32>
    %c0_8 = arith.constant 0 : index
    %c0_9 = arith.constant 0 : index
    %9 = vector.load %arg5[%c0_8, %c0_9] : memref<128x128xf32, #tpu.memory_space<vmem>>, vector<128x128xf32>
    tpu.vector_store %arg5[%c0_8, %c0_9], %8 {strides = array<i32>} : memref<128x128xf32, #tpu.memory_space<vmem>>, vector<128x128xf32>,
    return
  }
  func.func @transform_0(%arg0: i32) -> (i32, i32) {
    %c0_i32 = arith.constant 0 : i32
    %c0_i32_0 = arith.constant 0 : i32
    return %arg0, %c0_i32 : i32, i32
  }
  func.func @transform_1(%arg0: i32) -> (i32, i32) {
    %c0_i32 = arith.constant 0 : i32
    %c0_i32_0 = arith.constant 0 : i32
    %c0_i32_1 = arith.constant 0 : i32
    return %c0_i32, %c0_i32_0 : i32, i32
  }
  func.func @transform_2(%arg0: i32) -> (i32, i32) {
    %c0_i32 = arith.constant 0 : i32
    %c0_i32_0 = arith.constant 0 : i32
    %c0_i32_1 = arith.constant 0 : i32
    return %c0_i32, %c0_i32_0 : i32, i32
  }
  func.func @transform_3(%arg0: i32) -> (i32, i32) {
    %c0_i32 = arith.constant 0 : i32
    %c0_i32_0 = arith.constant 0 : i32
    %c0_i32_1 = arith.constant 0 : i32
    return %c0_i32, %c0_i32_0 : i32, i32
  }
  func.func @transform_4(%arg0: i32) -> (i32, i32) {
    %c0_i32 = arith.constant 0 : i32
    %c0_i32_0 = arith.constant 0 : i32
    return %arg0, %c0_i32 : i32, i32
  }
}

</mosaic_0001>

<bundles_post_ra>
// kernel: tpu_custom_call.1
= control target key start
LH: loop header
LB: loop body
LE: loop exit
PB: predicated region body
PF: predicated region fallthrough
CT: control target
= control target key end

     0   :  { %6 = vsyncpa [#allocation3], 0  ;;  %s102_s0 = inlined_call_operand.hbm [shape: f32[8,128], index: 0, kind: input, shape index: {}]   ;;  %s103_s1 = inlined_call_operand.hbm [shape: f32[8,128], index: 1, kind: output, shape index: {}]  }
   0x1   :  { %7 = vsyncpa [#allocation4], 0  ;;  %s84_s6 = smov [#allocation2]  }
   0x2   :  { %s14_s7 = sshll.u32 %s84_s6, 4  ;;  %s15_s7 = int_to_ptr.vmem [resolvable:$true] %s14_s7 }
   0x3   :  { %s48_s8 = scalar_lea.vmem %s15_s7, 128  ;;  %p53_p1 = scmp.lt.s32.totalorder %s15_s7, %s15_s7 }
   0x4   :  { %p49_p0 = scmp.ne.s32.totalorder %s15_s7, %s48_s8  ;;  %p54_p2 = scmp.lt.s32.totalorder %s48_s8, %s48_s8 }
   0x6   :  { %p55_p3 = por %p54_p2, %p53_p1 }
   0x8   :  { %p56_p4 = pnand %p55_p3, %p49_p0 }
   0xa   :  { %59 = shalt.err (!%p56_p4)
}
   0xb   :  { %17 = dma.hbm_to_vmem [thread:$0]  %s102_s0, 128, %s15_s7, [#allocation3]  }
   0xc   :  { %80 = dma.done.wait [#allocation3], 128  }
   0xd   :  { %81 = vsyncadd [#allocation3], 4294967168  ;;  %s85_s11 = smov [#allocation5]   ;;  %v21_v0 = vld [vmem:[#allocation2] sm:$0xff] }
   0xe   :  { %s29_s12 = sshll.u32 %s85_s11, 4  ;;  %22 = vst [vmem:[#allocation5] sm:$0xff] %v21_v0  ;;  %s30_s12 = int_to_ptr.vmem [resolvable:$true] %s29_s12 }
   0xf   :  { %s60_s13 = scalar_lea.vmem %s30_s12, 128  ;;  %p65_p6 = scmp.lt.s32.totalorder %s30_s12, %s30_s12 }
  0x10   :  { %p61_p5 = scmp.ne.s32.totalorder %s30_s12, %s60_s13  ;;  %p66_p7 = scmp.lt.s32.totalorder %s60_s13, %s60_s13 }
  0x12   :  { %p67_p8 = por %p66_p7, %p65_p6 }
  0x14   :  { %p68_p9 = pnand %p67_p8, %p61_p5 }
  0x16   :  { %71 = shalt.err (!%p68_p9)
}
  0x17   :  { %32 = dma.vmem_to_hbm [thread:$0]  %s30_s12, 128, %s103_s1, [#allocation4]  }
  0x18   :  { %82 = dma.done.wait [#allocation4], 128  }
  0x19   :  { %83 = vsyncadd [#allocation4], 4294967168 }
  0x1a   :  { %36 = vsyncpa [#allocation3], 1 }
  0x1b   :  { %37 = vsyncpa [#allocation4], 1 }

// kernel: _graph_convolution_impl.1
= control target key start
LH: loop header
LB: loop body
LE: loop exit
PB: predicated region body
PF: predicated region fallthrough
CT: control target
= control target key end

     0   :  { %9 = vsyncpa [#allocation3], 0  ;;  %s1356_s0 = inlined_call_operand.vmem [shape: bf16[256,256], index: 0, kind: input, shape index: {}]   ;;  %s1357_s1 = inlined_call_operand.vmem [shape: bf16[256,128], index: 1, kind: input, shape index: {}]   ;;  %s1358_s2 = inlined_call_operand.vmem [shape: bf16[128,128], index: 2, kind: input, shape index: {}]   ;;  %s1359_s3 = inlined_call_operand.vmem [shape: f32[1,128], index: 3, kind: input, shape index: {}]   ;;  %s1360_s4 = inlined_call_operand.hbm [shape: f32[256,128], index: 4, kind: output, shape index: {}]  }
   0x1   :  { %11 = vsyncpa [#allocation3 + $0x1], 0  ;;  %s1139_s15 = smov 0   ;;  %s1141_s16 = smov 0  }
   0x2   :  { %s1143_s17 = smov 0   ;;  %s1145_s18 = smov 0  }
   0x3 LB: > { %s1160_s19 = sadd.s32 4294967295, %s1109_s18   ;;  %s792_s20 = sadd.s32 4294967294, %s1109_s18   ;;  %s1109_s18 = sphi %s1145_s18, %s1366_s18   ;;  %s1105_s17 = sphi %s1143_s17, %s1365_s17   ;;  %s1101_s16 = sphi %s1141_s16, %s1364_s16   ;;  %s1097_s15 = sphi %s1139_s15, %s1363_s15  }
   0x4   : > { %s1164_s21 = sadd.s32 1, %s1109_s18   ;;  %s113_s22 = sadd.s32 1, %s1105_s17 }
   0x5   : > { %s110_s23 = ssub.s32 %s1109_s18, %s1164_s21  ;;  %p123_p0 = scmp.ne.s32.totalorder %s1105_s17, %s1101_s16 }
   0x6   : > { %p111_p1 = scmp.eq.s32.totalorder %s110_s23, 0  ;;  %p124_p2 = scmp.eq.s32.totalorder %s1160_s19, 1 }
   0x7   : > { %p129_p3 = scmp.ne.s32.totalorder %s1101_s16, %s1097_s15  ;;  %p130_p4 = scmp.eq.s32.totalorder %s792_s20, 1 }
   0x8   : > { %s1175_s24 = scalar_select %p111_p1, %s1105_s17, %s113_s22  }
   0x9   : > { %p1177_p5 = por %p124_p2, %p123_p0  ;;  %p1181_p6 = por %p130_p4, %p129_p3 }
   0xa   : > { %p795_p7 = scmp.ge.s32.totalorder %s1109_s18, 1  ;;  %p167_p8 = scmp.lt.s32.totalorder %s1109_s18, 3 }
   0xc   : > { %p168_p9 = pnand %p795_p7, %p167_p8 }
   0xd   : > { %s797_s29 = sshll.u32 (!%p168_p9), %s1160_s19, 4  ;;  %s191_s30 = sand.u32 (!%p168_p9), 1, %s1101_s16  }
   0xe   : > { %171 = sbr.rel (%p168_p9) target bundleno = 526 (0x20e), region = 36  ;;  %p195_p10 = scmp.lt.s32.totalorder (!%p168_p9), %s797_s29, 31 }
   0xf   : > { %s796_s5 = sshll.u32 (!%p168_p9), %s191_s30, 7  ;;  %s847_s10 = sshll.u32 (!%p168_p9), %s1160_s19, 11 }
  0x10   : > { %s1287_s9 = scalar_lea.vmem (!%p168_p9), [#allocation2], %s796_s5  ;;  %s1308_s13 = scalar_lea.hbm (!%p168_p9), %s1360_s4, %s847_s10 }
  0x11   : > { %s730_s11 = sshll.u32 (!%p168_p9), %s1287_s9, 4  ;;  %s1316_s19 = scalar_lea.sflag (!%p168_p9), [#allocation3], %s191_s30  ;;  %s1310_s11 = int_to_ptr.vmem [resolvable:$true] %s730_s11 }
  0x12   : > { %s1049_s14 = scalar_lea.vmem (!%p168_p9), %s1310_s11, 2048  ;;  %s1111_s20 = smov (!%p168_p9), [#allocation2]  }
  0x13   : > { %v1001_v0 = vld [vmem:[%s1357_s1 + $0x78] sm:$0xff]   ;;  %v1003_v2 = vld [vmem:[%s1357_s1 + $0x70] sm:$0xff]   ;;  %v1005_v4 = vld [vmem:[%s1357_s1 + $0x68] sm:$0xff]   ;;  %s1368_s29 = smov (!%p195_p10, %s797_s29), 31  ;;  %p1050_p11 = scmp.ne.s32.totalorder %s1310_s11, %s1049_s14 }
  0x14   : > { %v1002_v1 = vld [vmem:[%s1357_s1 + $0x38] sm:$0xff]   ;;  %848 = vmatprep.subr.bf16.mxu0 %v1001_v0  ;;  %v1004_v3 = vld [vmem:[%s1357_s1 + $0x30] sm:$0xff]   ;;  %v1006_v5 = vld [vmem:[%s1357_s1 + $0x28] sm:$0xff]   ;;  %s846_s27 = sshll.u32 %s1368_s29, 3  ;;  %s1053_s22 = sshll.u32 %s1111_s20, 4  ;;  %s1054_s22 = int_to_ptr.vmem [resolvable:$false] %s1053_s22 }
  0x15   : > { %849 = vmatpush3.bf16.msra.mxu0 %v1002_v1  ;;  %v1007_v6 = vld [vmem:[%s1357_s1 + $0x60] sm:$0xff]   ;;  %v1009_v8 = vld [vmem:[%s1357_s1 + $0x58] sm:$0xff]   ;;  %s1218_s7 = scalar_lea.vmem %s1356_s0, %s846_s27  ;;  %v1011_v10 = vld [vmem:[%s1357_s1 + $0x50] sm:$0xff]   ;;  %p1051_p12 = pnand %p1050_p11, %p1177_p5 }
  0x16   : > { %850 = vmatprep.subr.bf16.mxu0 %v1003_v2  ;;  %v1008_v7 = vld [vmem:[%s1357_s1 + $0x20] sm:$0xff]   ;;  %v1010_v9 = vld [vmem:[%s1357_s1 + $0x18] sm:$0xff]   ;;  %v1012_v12 = vld [vmem:[%s1357_s1 + $0x10] sm:$0xff]   ;;  %s1055_s23 = scalar_lea.vmem %s1054_s22, 4096  ;;  %p1056_p0 = scmp.lt.s32.totalorder %s1310_s11, %s1054_s22 }
  0x17   : > { %v1019_v11 = vld [vmem:[%s1218_s7 + $0x4] ss:$8 sps:$4 sm:$0xff]   ;;  %v1041_v17 = vld [vmem:[%s1358_s2 + $0x38] sm:$0xff]   ;;  %v1017_v18 = vld [vmem:[%s1218_s7] ss:$8 sps:$4 sm:$0xff]   ;;  %p1052_p13 = pneg %p1051_p12  ;;  %p1057_p1 = scmp.lt.s32.totalorder %s1055_s23, %s1049_s14 }
  0x18   : > { %459 = vmatprep.mubr.bf16.mxu0 %v1019_v11  ;;  %v1013_v13 = vld [vmem:[%s1357_s1 + $0x48] sm:$0xff]   ;;  %v1015_v15 = vld [vmem:[%s1357_s1 + $0x40] sm:$0xff]   ;;  %v1042_v19 = vld [vmem:[%s1358_s2 + $0x30] sm:$0xff]   ;;  %928 = vmatprep.subr.bf16.mxu1 %v1041_v17 }
  0x19   : > { %851 = vmatpush3.bf16.msra.mxu0 %v1004_v3  ;;  %v1014_v14 = vld [vmem:[%s1357_s1 + $0x8] sm:$0xff]   ;;  %v1016_v16 = vld [vmem:[%s1357_s1] sm:$0xff]   ;;  %v1020_v20 = vld [vmem:[%s1218_s7 + $0x14] ss:$8 sps:$4 sm:$0xff]   ;;  %929 = vmatpush3.bf16.msra.mxu1 %v1041_v17  ;;  %p1058_p2 = por %p1057_p1, %p1056_p0 }
  0x1a   : > { %852 = vmatprep.subr.bf16.mxu0 %v1005_v4  ;;  %v1043_v21 = vld [vmem:[%s1358_s2 + $0x28] sm:$0xff]   ;;  %930 = vmatprep.subr.bf16.mxu1 %v1042_v19  ;;  %v1044_v22 = vld [vmem:[%s1358_s2 + $0x20] sm:$0xff]   ;;  %v1022_v23 = vld [vmem:[%s1218_s7 + $0x10] ss:$8 sps:$4 sm:$0xff]  }
  0x1b   : > { %v1023_v24 = vld [vmem:[%s1218_s7 + $0x24] ss:$8 sps:$4 sm:$0xff]   ;;  %v1025_v25 = vld [vmem:[%s1218_s7 + $0x20] ss:$8 sps:$4 sm:$0xff]   ;;  %v1026_v26 = vld [vmem:[%s1218_s7 + $0x34] ss:$8 sps:$4 sm:$0xff]   ;;  %p1059_p3 = pnand %p1058_p2, %p1052_p13 }
  0x1c   : > { %v1028_v27 = vld [vmem:[%s1218_s7 + $0x30] ss:$8 sps:$4 sm:$0xff]   ;;  %v1029_v28 = vld [vmem:[%s1218_s7 + $0x44] ss:$8 sps:$4 sm:$0xff]   ;;  %v1031_v29 = vld [vmem:[%s1218_s7 + $0x40] ss:$8 sps:$4 sm:$0xff]  }
  0x1d   : > { %853 = vmatpush3.bf16.msra.mxu0 %v1006_v5  ;;  %931 = vmatpush3.bf16.msra.mxu1 %v1042_v19  ;;  %v1032_v30 = vld [vmem:[%s1218_s7 + $0x54] ss:$8 sps:$4 sm:$0xff]   ;;  %v1034_v31 = vld [vmem:[%s1218_s7 + $0x50] ss:$8 sps:$4 sm:$0xff]   ;;  %v1035_v32 = vld [vmem:[%s1218_s7 + $0x64] ss:$8 sps:$4 sm:$0xff]  }
  0x1e   : > { %854 = vmatprep.subr.bf16.mxu0 %v1007_v6  ;;  %932 = vmatprep.subr.bf16.mxu1 %v1043_v21  ;;  %v1037_v33 = vld [vmem:[%s1218_s7 + $0x60] ss:$8 sps:$4 sm:$0xff]   ;;  %v1038_v34 = vld [vmem:[%s1218_s7 + $0x74] ss:$8 sps:$4 sm:$0xff]   ;;  %v1040_v35 = vld [vmem:[%s1218_s7 + $0x70] ss:$8 sps:$4 sm:$0xff]  }
  0x1f   : > { %v1045_v36 = vld [vmem:[%s1358_s2 + $0x18] sm:$0xff]   ;;  %v1046_v37 = vld [vmem:[%s1358_s2 + $0x10] sm:$0xff]   ;;  %v1047_v38 = vld [vmem:[%s1358_s2 + $0x8] sm:$0xff]  }
  0x20   : > { %v1048_v39 = vld [vmem:[%s1358_s2] sm:$0xff]  }
  0x21   : > { %855 = vmatpush3.bf16.msra.mxu0 %v1008_v7  ;;  %933 = vmatpush3.bf16.msra.mxu1 %v1043_v21 }
  0x22   : > { %856 = vmatprep.subr.bf16.mxu0 %v1009_v8  ;;  %934 = vmatprep.subr.bf16.mxu1 %v1044_v22 }
  0x25   : > { %857 = vmatpush3.bf16.msra.mxu0 %v1010_v9  ;;  %935 = vmatpush3.bf16.msra.mxu1 %v1044_v22 }
  0x26   : > { %858 = vmatprep.subr.bf16.mxu0 %v1011_v10  ;;  %936 = vmatprep.subr.bf16.mxu1 %v1045_v36 }
  0x29   : > { %859 = vmatpush3.bf16.msra.mxu0 %v1012_v12  ;;  %937 = vmatpush3.bf16.msra.mxu1 %v1045_v36 }
  0x2a   : > { %860 = vmatprep.subr.bf16.mxu0 %v1013_v13  ;;  %938 = vmatprep.subr.bf16.mxu1 %v1046_v37 }
  0x2d   : > { %861 = vmatpush3.bf16.msra.mxu0 %v1014_v14  ;;  %939 = vmatpush3.bf16.msra.mxu1 %v1046_v37 }
  0x2e   : > { %862 = vmatprep.subr.bf16.mxu0 %v1015_v15  ;;  %940 = vmatprep.subr.bf16.mxu1 %v1047_v38 }
  0x31   : > { %863 = vmatpush3.bf16.msra.mxu0 %v1016_v16  ;;  %941 = vmatpush3.bf16.msra.mxu1 %v1047_v38 }
  0x32   : > { %942 = vmatprep.subr.bf16.mxu1 %v1048_v39 }
  0x34   : > { %460 = vmatmul.mubr.bf16.vlgmr.msra.gmra.mxu0 %v1017_v18 }
  0x35   : > { %467 = vmatprep.mubr.bf16.mxu0 %v1020_v20  ;;  %943 = vmatpush3.bf16.msra.mxu1 %v1048_v39 }
  0x3c   : > { %468 = vmatmul.mubr.bf16.gmra.mxu0 %v1022_v23 }
  0x3d   : > { %475 = vmatprep.mubr.bf16.mxu0 %v1023_v24 }
  0x44   : > { %476 = vmatmul.mubr.bf16.gmra.mxu0 %v1025_v25 }
  0x45   : > { %483 = vmatprep.mubr.bf16.mxu0 %v1026_v26 }
  0x4c   : > { %484 = vmatmul.mubr.bf16.gmra.mxu0 %v1028_v27 }
  0x4d   : > { %491 = vmatprep.mubr.bf16.mxu0 %v1029_v28 }
  0x54   : > { %492 = vmatmul.mubr.bf16.gmra.mxu0 %v1031_v29 }
  0x55   : > { %499 = vmatprep.mubr.bf16.mxu0 %v1032_v30 }
  0x5c   : > { %500 = vmatmul.mubr.bf16.gmra.mxu0 %v1034_v31 }
  0x5d   : > { %507 = vmatprep.mubr.bf16.mxu0 %v1035_v32  ;;  %v832_v32 = vld [vmem:[%s1359_s3] ss:$0 sm:$0xff] }
  0x64   : > { %508 = vmatmul.mubr.bf16.gmra.mxu0 %v1037_v33 }
  0x65   : > { %515 = vmatprep.mubr.bf16.mxu0 %v1038_v34 }
  0x6c   : > { %516 = vmatmul.mubr.bf16.gmra.mxu0 %v1040_v35 }
  0xf4   : > { %v864_v40 = vpop.f32.mrf.mxu0 }
  0xf6   : > { %v865_v41 = vpop.f32.mrf.mxu0 }
  0xf7   : > { %v866_v44 = vadd.f32 %v865_v41, %v864_v40 }
  0xf8   : > { %v867_v42 = vpop.f32.mrf.mxu0 }
  0xfa   : > { %v868_v43 = vpop.f32.mrf.mxu0 }
  0xfb   : > { %v869_v45 = vadd.f32 %v868_v43, %v867_v42 }
  0xfc   : > { %v870_v46 = vpop.f32.mrf.mxu0 }
  0xfd   : > { %v524_v47 = vpack.c.bf16 %v869_v45, %v866_v44 }
  0xfe   : > { %v871_v48 = vpop.f32.mrf.mxu0 }
  0xff   : > { %944 = vmatprep.mubr.bf16.mxu1 %v524_v47  ;;  %v872_v51 = vadd.f32 %v871_v48, %v870_v46 }
 0x100   : > { %v873_v49 = vpop.f32.mrf.mxu0 }
 0x102   : > { %v874_v50 = vpop.f32.mrf.mxu0 }
 0x103   : > { %v875_v52 = vadd.f32 %v874_v50, %v873_v49 }
 0x104   : > { %v876_v53 = vpop.f32.mrf.mxu0 }
 0x105   : > { %v525_v54 = vpack.c.bf16 %v875_v52, %v872_v51 }
 0x106   : > { %v877_v55 = vpop.f32.mrf.mxu0 }
 0x107   : > { %945 = vmatmul.mubr.bf16.vlgmr.msra.gmra.mxu1 %v525_v54  ;;  %v878_v58 = vadd.f32 %v877_v55, %v876_v53 }
 0x108   : > { %v879_v56 = vpop.f32.mrf.mxu0 }
 0x10a   : > { %v880_v57 = vpop.f32.mrf.mxu0 }
 0x10b   : > { %v881_v59 = vadd.f32 %v880_v57, %v879_v56 }
 0x10c   : > { %v882_v60 = vpop.f32.mrf.mxu0 }
 0x10d   : > { %v526_v61 = vpack.c.bf16 %v881_v59, %v878_v58 }
 0x10e   : > { %v883_v62 = vpop.f32.mrf.mxu0 }
 0x10f   : > { %948 = vmatprep.mubr.bf16.mxu1 %v526_v61  ;;  %v884_v1 = vadd.f32 %v883_v62, %v882_v60 }
 0x110   : > { %v885_v63 = vpop.f32.mrf.mxu0 }
 0x112   : > { %v886_v0 = vpop.f32.mrf.mxu0 }
 0x113   : > { %v887_v2 = vadd.f32 %v886_v0, %v885_v63 }
 0x114   : > { %v888_v3 = vpop.f32.mrf.mxu0 }
 0x115   : > { %v527_v4 = vpack.c.bf16 %v887_v2, %v884_v1 }
 0x116   : > { %v889_v5 = vpop.f32.mrf.mxu0 }
 0x117   : > { %949 = vmatmul.mubr.bf16.gmra.mxu1 %v527_v4  ;;  %v890_v8 = vadd.f32 %v889_v5, %v888_v3 }
 0x118   : > { %v891_v6 = vpop.f32.mrf.mxu0 }
 0x11a   : > { %v892_v7 = vpop.f32.mrf.mxu0 }
 0x11b   : > { %v893_v9 = vadd.f32 %v892_v7, %v891_v6 }
 0x11c   : > { %v894_v10 = vpop.f32.mrf.mxu0 }
 0x11d   : > { %v528_v11 = vpack.c.bf16 %v893_v9, %v890_v8 }
 0x11e   : > { %v895_v12 = vpop.f32.mrf.mxu0 }
 0x11f   : > { %952 = vmatprep.mubr.bf16.mxu1 %v528_v11  ;;  %v896_v15 = vadd.f32 %v895_v12, %v894_v10 }
 0x120   : > { %v897_v13 = vpop.f32.mrf.mxu0 }
 0x122   : > { %v898_v14 = vpop.f32.mrf.mxu0 }
 0x123   : > { %v899_v16 = vadd.f32 %v898_v14, %v897_v13 }
 0x124   : > { %v900_v17 = vpop.f32.mrf.mxu0 }
 0x125   : > { %v529_v18 = vpack.c.bf16 %v899_v16, %v896_v15 }
 0x126   : > { %v901_v19 = vpop.f32.mrf.mxu0 }
 0x127   : > { %953 = vmatmul.mubr.bf16.gmra.mxu1 %v529_v18  ;;  %v902_v22 = vadd.f32 %v901_v19, %v900_v17 }
 0x128   : > { %v903_v20 = vpop.f32.mrf.mxu0 }
 0x12a   : > { %v904_v21 = vpop.f32.mrf.mxu0 }
 0x12b   : > { %v905_v23 = vadd.f32 %v904_v21, %v903_v20 }
 0x12c   : > { %v906_v24 = vpop.f32.mrf.mxu0 }
 0x12d   : > { %v530_v25 = vpack.c.bf16 %v905_v23, %v902_v22 }
 0x12e   : > { %v907_v26 = vpop.f32.mrf.mxu0 }
 0x12f   : > { %956 = vmatprep.mubr.bf16.mxu1 %v530_v25  ;;  %v908_v29 = vadd.f32 %v907_v26, %v906_v24 }
 0x130   : > { %v909_v27 = vpop.f32.mrf.mxu0 }
 0x132   : > { %v910_v28 = vpop.f32.mrf.mxu0 }
 0x133   : > { %v911_v30 = vadd.f32 %v910_v28, %v909_v27 }
 0x135   : > { %v531_v31 = vpack.c.bf16 %v911_v30, %v908_v29 }
 0x137   : > { %957 = vmatmul.mubr.bf16.gmra.mxu1 %v531_v31 }
 0x1c7   : > { %v946_v33 = vpop.f32.mrf.mxu1 }
 0x1c8   : > { %v646_v34 = vadd.f32 %v946_v33, %v832_v32 }
 0x1c9   : > { %v637_v35 = vpop.f32.mrf.mxu1 }
 0x1ca   : > { %702 = vst [vmem:[%s1287_s9 + $0x10] sm:$0xff] %v646_v34  ;;  %v638_v36 = vadd.f32 %v832_v32, %v637_v35 }
 0x1cb   : > { %v947_v37 = vpop.f32.mrf.mxu1 }
 0x1cc   : > { %700 = vst [vmem:[%s1287_s9] sm:$0xff] %v638_v36  ;;  %v649_v38 = vadd.f32 %v947_v37, %v832_v32 }
 0x1cd   : > { %v640_v39 = vpop.f32.mrf.mxu1 }
 0x1ce   : > { %703 = vst [vmem:[%s1287_s9 + $0x18] sm:$0xff] %v649_v38  ;;  %v641_v40 = vadd.f32 %v832_v32, %v640_v39 }
 0x1d0   : > { %701 = vst [vmem:[%s1287_s9 + $0x8] sm:$0xff] %v641_v40 }
 0x1d7   : > { %v950_v41 = vpop.f32.mrf.mxu1 }
 0x1d8   : > { %v662_v42 = vadd.f32 %v950_v41, %v832_v32 }
 0x1d9   : > { %v653_v43 = vpop.f32.mrf.mxu1 }
 0x1da   : > { %706 = vst [vmem:[%s1287_s9 + $0x30] sm:$0xff] %v662_v42  ;;  %v654_v44 = vadd.f32 %v832_v32, %v653_v43 }
 0x1db   : > { %v951_v45 = vpop.f32.mrf.mxu1 }
 0x1dc   : > { %704 = vst [vmem:[%s1287_s9 + $0x20] sm:$0xff] %v654_v44  ;;  %v665_v46 = vadd.f32 %v951_v45, %v832_v32 }
 0x1dd   : > { %v656_v47 = vpop.f32.mrf.mxu1 }
 0x1de   : > { %707 = vst [vmem:[%s1287_s9 + $0x38] sm:$0xff] %v665_v46  ;;  %v657_v48 = vadd.f32 %v832_v32, %v656_v47 }
 0x1e0   : > { %705 = vst [vmem:[%s1287_s9 + $0x28] sm:$0xff] %v657_v48 }
 0x1e7   : > { %v954_v49 = vpop.f32.mrf.mxu1 }
 0x1e8   : > { %v678_v50 = vadd.f32 %v954_v49, %v832_v32 }
 0x1e9   : > { %v669_v51 = vpop.f32.mrf.mxu1 }
 0x1ea   : > { %710 = vst [vmem:[%s1287_s9 + $0x50] sm:$0xff] %v678_v50  ;;  %v670_v52 = vadd.f32 %v832_v32, %v669_v51 }
 0x1eb   : > { %v955_v53 = vpop.f32.mrf.mxu1 }
 0x1ec   : > { %708 = vst [vmem:[%s1287_s9 + $0x40] sm:$0xff] %v670_v52  ;;  %v681_v54 = vadd.f32 %v955_v53, %v832_v32 }
 0x1ed   : > { %v672_v55 = vpop.f32.mrf.mxu1 }
 0x1ee   : > { %711 = vst [vmem:[%s1287_s9 + $0x58] sm:$0xff] %v681_v54  ;;  %v673_v56 = vadd.f32 %v832_v32, %v672_v55 }
 0x1f0   : > { %709 = vst [vmem:[%s1287_s9 + $0x48] sm:$0xff] %v673_v56 }
 0x1f7   : > { %v958_v57 = vpop.f32.mrf.mxu1 }
 0x1f8   : > { %v694_v58 = vadd.f32 %v958_v57, %v832_v32 }
 0x1f9   : > { %v685_v59 = vpop.f32.mrf.mxu1 }
 0x1fa   : > { %714 = vst [vmem:[%s1287_s9 + $0x70] sm:$0xff] %v694_v58  ;;  %v686_v60 = vadd.f32 %v832_v32, %v685_v59 }
 0x1fb   : > { %v959_v61 = vpop.f32.mrf.mxu1 }
 0x1fc   : > { %712 = vst [vmem:[%s1287_s9 + $0x60] sm:$0xff] %v686_v60  ;;  %v697_v62 = vadd.f32 %v959_v61, %v832_v32 }
 0x1fd   : > { %v688_v63 = vpop.f32.mrf.mxu1 }
 0x1fe   : > { %715 = vst [vmem:[%s1287_s9 + $0x78] sm:$0xff] %v697_v62  ;;  %v689_v0 = vadd.f32 %v832_v32, %v688_v63 }
 0x200   : > { %713 = vst [vmem:[%s1287_s9 + $0x68] sm:$0xff] %v689_v0 }
 0x201   : > { %1062 = shalt.err (!%p1059_p3)
}
 0x202   : > { %s1063_s27 = scalar_lea.hbm %s1308_s13, 2048  ;;  %s1067_s30 = scalar_lea.hbm %s1360_s4, 4096 }
 0x203   : > { %p1064_p4 = scmp.ne.s32.totalorder %s1308_s13, %s1063_s27  ;;  %p1068_p9 = scmp.lt.s32.totalorder %s1308_s13, %s1360_s4 }
 0x204   : > { %p1069_p10 = scmp.lt.s32.totalorder %s1067_s30, %s1063_s27 }
 0x205   : > { %p1065_p7 = pnand %p1064_p4, %p1177_p5 }
 0x206   : > { %p1070_p11 = por %p1069_p10, %p1068_p9 }
 0x207   : > { %p1066_p8 = pneg %p1065_p7 }
 0x209   : > { %p1071_p12 = pnand %p1070_p11, %p1066_p8 }
 0x20b   : > { %1074 = shalt.err (!%p1071_p12)
}
 0x20c   : > { %s1112_s8 = smov 128   ;;  %s1113_s9 = smov 8  }
 0x20d   : > { %960 = dma.vmem_to_hbm [thread:$0]  (%p1177_p5), %s1310_s11, 2048, %s1308_s13, %s1316_s19, %s1112_s8, %s1112_s8, %s1113_s9  }
 0x20e PF: > { %p966_p13 = scmp.ge.s32.totalorder %s1109_s18, 2  ;;  %s745_s10 = sand.u32 1, %s1097_s15  }
 0x20f   : > { %s746_s29 = scalar_lea.sflag [#allocation3], %s745_s10 }
 0x210   : > { %p963_p0 = pnand %p966_p13, %p1181_p6 }
 0x212   : > { %p964_p1 = pneg %p963_p0 }
 0x214   : > { %1092 = dma.done.wait (%p964_p1), %s746_s29, 2048  }
 0x215   : > { %1094 = vsyncadd (%p964_p1), %s746_s29, 4294965248  ;;  %p14_p2 = scmp.ge.s32.totalorder %s1164_s21, 4   ;;  %s1363_s15 = smov %s1101_s16 }
 0x216   : > { %s1364_s16 = smov %s1105_s17  ;;  %s1365_s17 = smov %s1175_s24 }
 0x217   : > { %s1366_s18 = smov %s1164_s21  ;;  %16 = sbr.rel (!%p14_p2) target bundleno = 3 (0x3), region = 71 }
 0x21c   :  { %751 = vsyncpa [#allocation3], 1 }
 0x21d   :  { %753 = vsyncpa [#allocation3 + $0x1], 1 }

</bundles_post_ra>
